<compile_context>
chip_gen: v6e
topology: v6e:2x2x1
jax: 0.10.0
libtpu: 0.0.40
codegen_flags: <defaults>
</compile_context>

<pallas_src>
import math

import jax
import jax.numpy as jnp
from jax import lax
from jax.experimental import pallas as pl
from jax.experimental.pallas import tpu as pltpu


def _mult_attn_kernel(q_ref, w_ref, b_ref, k_ref, o_ref, tq_ref):
    # q_ref: (1, TQ, D)   w_ref: (D, D)   b_ref: (1, D) f32   k_ref: (1, TK, D)
    # o_ref: (1, TQ, TK)  tq_ref: VMEM scratch (TQ, D) in the compute dtype
    contract_last = (((1,), (1,)), ((), ()))   # contract last dim of both operands

    # The (scaled) linear transform of the query tile is computed once per query
    # tile (Lk is the innermost grid axis) and reused for every key tile.
    @pl.when(pl.program_id(2) == 0)
    def _():
        tq = lax.dot_general(q_ref[0], w_ref[...],
                             dimension_numbers=contract_last,
                             preferred_element_type=jnp.float32)
        tq_ref[...] = (tq + b_ref[...]).astype(tq_ref.dtype)

    # logits tile = tq @ k.T  (1/sqrt(D) already folded into W / b).
    # Store straight into the output ref; f32 accumulation on the MXU.
    o_ref[0] = lax.dot_general(tq_ref[...], k_ref[0],
                               dimension_numbers=contract_last,
                               preferred_element_type=jnp.float32
                               ).astype(o_ref.dtype)


def _round_up(x, m):
    return ((x + m - 1) // m) * m


def _device_defaults():
    """Per-generation (TQ, TK, vmem_limit_cap).  v5e/v6e: 128 MiB VMEM -> big tiles;
    v7x (or unknown): 64 MiB per TensorCore -> stay conservative."""
    try:
        vmem_cap = pltpu.get_tpu_info().vmem_capacity_bytes
    except Exception:
        vmem_cap = 64 << 20
    if vmem_cap >= (100 << 20):          # v5e / v6e (128 MiB VMEM)
        return 512, 2048, 96 << 20
    return 512, 1024, 44 << 20           # v7x (64 MiB per TC)


def multiplicative_attn(queries, keys, weight, bias, *, is_scale=True,
                        tq=None, tk=None, out_dtype=jnp.float32):
    """queries: (B, Lq, D), keys: (B, Lk, D), weight: (D, D), bias: (D,)."""
    B, Lq, D = queries.shape
    Bk, Lk, Dk = keys.shape
    assert B == Bk and D == Dk and weight.shape == (D, D) and bias.shape == (D,)

    # ---- dtype handling: keep the incoming precision (bf16 stays bf16). ----
    compute_dtype = jnp.promote_types(queries.dtype, keys.dtype)
    if compute_dtype in (jnp.float64, jnp.float16):
        compute_dtype = jnp.float32 if compute_dtype == jnp.float64 else jnp.bfloat16
    q_in = queries.astype(compute_dtype)
    k_in = keys.astype(compute_dtype)

    # Fold the 1/sqrt(D) scaling into the linear parameters (exact rewrite):
    #   ((q @ W.T + b) @ k.T) * s == (q @ (s*W).T + s*b) @ k.T
    scale = (1.0 / math.sqrt(D)) if is_scale else 1.0
    w_c = (weight.astype(jnp.float32) * scale).astype(compute_dtype)
    b_c = (bias.astype(jnp.float32) * scale).reshape(1, D)          # stays f32

    # ---- tile selection (per-generation defaults, ragged grid, no padding). ----
    tq_def, tk_def, vmem_cap_limit = _device_defaults()
    tq = tq_def if tq is None else tq
    tk = tk_def if tk is None else tk

    TQ = Lq if Lq <= tq else _round_up(tq, 8)
    # v7x megacore: with B == 1 make sure the Lq axis yields >= 2 parallel blocks.
    if B == 1 and Lq >= 16:
        TQ = min(TQ, _round_up(pl.cdiv(Lq, 2), 8))
    # Output lane dimension: full extent for short Lk, otherwise a multiple of 128
    # so stores stay lane-dense (unmasked vst).
    TK = Lk if Lk <= tk else _round_up(tk, 128)

    nq = pl.cdiv(Lq, TQ)
    nk = pl.cdiv(Lk, TK)

    # TODO(synk): for many-batch / tiny-Lq,Lk workloads, fold B into the row dim of
    # the linear ((B*Lq, D) matmul) and restructure the logits grid so the output
    # lane dim is >= 128 instead of Lk; small-shape path currently underuses the MXU.

    # ---- VMEM budget from the chosen tiles (double-buffered streamed operands). ----
    c_sz = jnp.dtype(compute_dtype).itemsize
    o_sz = jnp.dtype(out_dtype).itemsize
    est = (2 * TQ * D * c_sz          # queries (double-buffered)
           + 2 * TK * D * c_sz        # keys
           + 2 * TQ * TK * o_sz       # output
           + 2 * D * D * c_sz + 2 * D * 4   # weight + bias
           + TQ * D * c_sz)           # tq scratch
    vmem_limit = min(max(int(est * 1.5) + (8 << 20), 32 << 20), vmem_cap_limit)

    cost = pl.CostEstimate(
        flops=2 * B * Lq * D * D + 2 * B * Lq * Lk * D,
        transcendentals=0,
        bytes_accessed=(B * Lq * D * c_sz            # queries read once
                        + B * Lk * D * c_sz * nq     # keys re-streamed per q tile
                        + D * D * c_sz + D * 4
                        + B * Lq * Lk * o_sz),       # logits writeback (dominant)
    )

    q_spec = pl.BlockSpec((1, TQ, D), lambda b, i, j: (b, i, 0))
    k_spec = pl.BlockSpec((1, TK, D), lambda b, i, j: (b, j, 0))
    o_spec = pl.BlockSpec((1, TQ, TK), lambda b, i, j: (b, i, j))

    def build(single_buffer_invariants):
        # weight / bias are grid-invariant -> request single buffering to save VMEM.
        w_spec = b_spec = None
        if single_buffer_invariants and hasattr(pl, "Buffered"):
            try:
                w_spec = pl.BlockSpec((D, D), lambda b, i, j: (0, 0),
                                      pipeline_mode=pl.Buffered(1))
                b_spec = pl.BlockSpec((1, D), lambda b, i, j: (0, 0),
                                      pipeline_mode=pl.Buffered(1))
            except TypeError:
                w_spec = b_spec = None
        if w_spec is None:
            w_spec = pl.BlockSpec((D, D), lambda b, i, j: (0, 0))
            b_spec = pl.BlockSpec((1, D), lambda b, i, j: (0, 0))

        return pl.pallas_call(
            _mult_attn_kernel,
            out_shape=jax.ShapeDtypeStruct((B, Lq, Lk), out_dtype),
            grid_spec=pltpu.PrefetchScalarGridSpec(
                num_scalar_prefetch=0,
                grid=(B, nq, nk),                       # Lk innermost
                in_specs=[q_spec, w_spec, b_spec, k_spec],
                out_specs=o_spec,
                scratch_shapes=[pltpu.VMEM((TQ, D), compute_dtype)],  # cached q@W.T+b
            ),
            compiler_params=pltpu.CompilerParams(
                # B / Lq tiles are independent (shardable across v7x's 2 TCs);
                # Lk must stay sequential: the tq scratch is carried across it.
                dimension_semantics=("parallel", "parallel", "arbitrary"),
                vmem_limit_bytes=vmem_limit,
            ),
            cost_estimate=cost,
        )

    try:
        return build(True)(q_in, w_c, b_c, k_in)
    except Exception:
        # Fallback for JAX/Mosaic versions that reject pipeline_mode=pl.Buffered(1).
        return build(False)(q_in, w_c, b_c, k_in)


def _reference(queries, keys, weight, bias, is_scale=True):
    q = queries.astype(jnp.float32)
    k = keys.astype(jnp.float32)
    tq = jnp.einsum("bqd,ed->bqe", q, weight.astype(jnp.float32)) + bias.astype(jnp.float32)
    logits = jnp.einsum("bqd,bkd->bqk", tq, k)
    if is_scale:
        logits = logits / math.sqrt(q.shape[-1])
    return logits


if __name__ == "__main__":
    root = jax.random.PRNGKey(0)

    def run_case(key, *, B, Lq, Lk, D, dtype=jnp.float32, atol, rtol, **kw):
        kq, kk, kwgt, kb = jax.random.split(key, 4)
        queries = jax.random.normal(kq, (B, Lq, D), dtype=jnp.float32).astype(dtype)
        keys = jax.random.normal(kk, (B, Lk, D), dtype=jnp.float32).astype(dtype)
        bound = 1.0 / math.sqrt(D)
        weight = jax.random.uniform(kwgt, (D, D), minval=-bound, maxval=bound,
                                    dtype=jnp.float32)
        bias = jax.random.uniform(kb, (D,), minval=-bound, maxval=bound,
                                  dtype=jnp.float32)

        out = multiplicative_attn(queries, keys, weight, bias, **kw)
        out = jax.block_until_ready(out)

        ref = _reference(queries, keys, weight, bias)
        assert out.shape == (B, Lq, Lk), (out.shape, (B, Lq, Lk))
        assert jnp.allclose(out.astype(jnp.float32), ref, atol=atol, rtol=rtol), \
            f"mismatch vs reference for B={B} Lq={Lq} Lk={Lk} D={D} dtype={dtype}"

    k1, k2, k3, k4 = jax.random.split(root, 4)
    # 1. Module-spec small shapes (single full-extent block path).
    run_case(k1, B=2, Lq=8, Lk=8, D=32, atol=2e-4, rtol=2e-4)
    # 2. Ragged tiling over Lq and Lk at the per-generation default tiles (no padding).
    run_case(k2, B=2, Lq=640, Lk=2304, D=128, atol=2e-4, rtol=2e-4)
    # 3. bf16 operands + explicit small tiles (exercises tq-scratch reuse across
    #    several Lk tiles and ragged boundaries on both axes).
    run_case(k3, B=2, Lq=320, Lk=600, D=128, dtype=jnp.bfloat16,
             atol=5e-2, rtol=5e-2, tq=128, tk=256)
    # 4. B == 1: Lq axis is split so both v7x TensorCores get work.
    run_case(k4, B=1, Lq=320, Lk=128, D=64, atol=2e-4, rtol=2e-4)

    print("KERNEL_OK")
</pallas_src>

<mosaic_0001>
module attributes {stable_mosaic.version = 11 : i64} {
  func.func @_mult_attn_kernel(%arg0: i32, %arg1: i32, %arg2: i32, %arg3: memref<1x8x32xf32, #tpu.memory_space<vmem>>, %arg4: memref<32x32xf32, #tpu.memory_space<vmem>>, %arg5: memref<1x32xf32, #tpu.memory_space<vmem>>, %arg6: memref<1x8x32xf32, #tpu.memory_space<vmem>>, %arg7: memref<1x8x8xf32, #tpu.memory_space<vmem>>, %arg8: memref<8x32xf32, #tpu.memory_space<vmem>>) attributes {dimension_semantics = [#tpu.dimension_semantics<parallel>, #tpu.dimension_semantics<parallel>, #tpu.dimension_semantics<arbitrary>], iteration_bounds = array<i64: 2, 1, 1>, scalar_prefetch = 0 : i64, scratch_operands = 1 : i64, tpu.core_type = #tpu.core_type<tc>, window_params = [{transform_indices = @transform_0, window_bounds = array<i64: 1, 8, 32>}, {pipeline_mode = #tpu.pipeline_mode<synchronous>, transform_indices = @transform_1, window_bounds = array<i64: 32, 32>}, {pipeline_mode = #tpu.pipeline_mode<synchronous>, transform_indices = @transform_2, window_bounds = array<i64: 1, 32>}, {transform_indices = @transform_3, window_bounds = array<i64: 1, 8, 32>}, {transform_indices = @transform_4, window_bounds = array<i64: 1, 8, 8>}]} {
    %c0_i32 = arith.constant 0 : i32
    %0 = arith.cmpi eq, %arg2, %c0_i32 : i32
    %1 = arith.extui %0 : i1 to i32
    %c0_i32_0 = arith.constant 0 : i32
    %2 = arith.cmpi ne, %1, %c0_i32_0 : i32
    scf.if %2 {
      %c0_8 = arith.constant 0 : index
      %c0_9 = arith.constant 0 : index
      %c0_10 = arith.constant 0 : index
      %10 = vector.load %arg3[%c0_8, %c0_9, %c0_10] : memref<1x8x32xf32, #tpu.memory_space<vmem>>, vector<1x8x32xf32>
      %11 = vector.shape_cast %10 : vector<1x8x32xf32> to vector<8x32xf32>
      %c0_11 = arith.constant 0 : index
      %c0_12 = arith.constant 0 : index
      %12 = vector.load %arg4[%c0_11, %c0_12] : memref<32x32xf32, #tpu.memory_space<vmem>>, vector<32x32xf32>
      %cst_13 = arith.constant dense<0.000000e+00> : vector<8x32xf32>
      %13 = tpu.matmul %11, %12, %cst_13 {dimension_numbers = #tpu.dot_dimension_numbers<[1], [1], [0], [0], [0, 0, 1, 0], [], []>} : vector<8x32xf32>, vector<32x32xf32>, vector<8x32xf32> -> vector<8x32xf32>
      %c0_14 = arith.constant 0 : index
      %c0_15 = arith.constant 0 : index
      %14 = vector.load %arg5[%c0_14, %c0_15] : memref<1x32xf32, #tpu.memory_space<vmem>>, vector<1x32xf32>
      %15 = vector.broadcast %14 : vector<1x32xf32> to vector<8x32xf32>
      %16 = arith.addf %13, %15 : vector<8x32xf32>
      %c0_16 = arith.constant 0 : index
      %c0_17 = arith.constant 0 : index
      %17 = vector.load %arg8[%c0_16, %c0_17] : memref<8x32xf32, #tpu.memory_space<vmem>>, vector<8x32xf32>
      tpu.vector_store %arg8[%c0_16, %c0_17], %16 {strides = array<i32>} : memref<8x32xf32, #tpu.memory_space<vmem>>, vector<8x32xf32>,
    } else {
    }
    %c0 = arith.constant 0 : index
    %c0_1 = arith.constant 0 : index
    %3 = vector.load %arg8[%c0, %c0_1] : memref<8x32xf32, #tpu.memory_space<vmem>>, vector<8x32xf32>
    %c0_2 = arith.constant 0 : index
    %c0_3 = arith.constant 0 : index
    %c0_4 = arith.constant 0 : index
    %4 = vector.load %arg6[%c0_2, %c0_3, %c0_4] : memref<1x8x32xf32, #tpu.memory_space<vmem>>, vector<1x8x32xf32>
    %5 = vector.shape_cast %4 : vector<1x8x32xf32> to vector<8x32xf32>
    %cst = arith.constant dense<0.000000e+00> : vector<8x8xf32>
    %6 = tpu.matmul %3, %5, %cst {dimension_numbers = #tpu.dot_dimension_numbers<[1], [1], [0], [0], [0, 0, 1, 0], [], []>} : vector<8x32xf32>, vector<8x32xf32>, vector<8x8xf32> -> vector<8x8xf32>
    %c0_5 = arith.constant 0 : index
    %c0_6 = arith.constant 0 : index
    %c0_7 = arith.constant 0 : index
    %7 = vector.load %arg7[%c0_5, %c0_6, %c0_7] : memref<1x8x8xf32, #tpu.memory_space<vmem>>, vector<1x8x8xf32>
    %8 = vector.shape_cast %7 : vector<1x8x8xf32> to vector<8x8xf32>
    %9 = vector.shape_cast %6 : vector<8x8xf32> to vector<1x8x8xf32>
    tpu.vector_store %arg7[%c0_5, %c0_6, %c0_7], %9 {strides = array<i32>} : memref<1x8x8xf32, #tpu.memory_space<vmem>>, vector<1x8x8xf32>,
    return
  }
  func.func @transform_0(%arg0: i32, %arg1: i32, %arg2: i32) -> (i32, i32, i32) {
    %c0_i32 = arith.constant 0 : i32
    %c0_i32_0 = arith.constant 0 : i32
    return %arg0, %arg1, %c0_i32 : i32, i32, i32
  }
  func.func @transform_1(%arg0: i32, %arg1: i32, %arg2: i32) -> (i32, i32) {
    %c0_i32 = arith.constant 0 : i32
    %c0_i32_0 = arith.constant 0 : i32
    %c0_i32_1 = arith.constant 0 : i32
    return %c0_i32, %c0_i32_0 : i32, i32
  }
  func.func @transform_2(%arg0: i32, %arg1: i32, %arg2: i32) -> (i32, i32) {
    %c0_i32 = arith.constant 0 : i32
    %c0_i32_0 = arith.constant 0 : i32
    %c0_i32_1 = arith.constant 0 : i32
    return %c0_i32, %c0_i32_0 : i32, i32
  }
  func.func @transform_3(%arg0: i32, %arg1: i32, %arg2: i32) -> (i32, i32, i32) {
    %c0_i32 = arith.constant 0 : i32
    %c0_i32_0 = arith.constant 0 : i32
    return %arg0, %arg2, %c0_i32 : i32, i32, i32
  }
  func.func @transform_4(%arg0: i32, %arg1: i32, %arg2: i32) -> (i32, i32, i32) {
    %c0_i32 = arith.constant 0 : i32
    return %arg0, %arg1, %arg2 : i32, i32, i32
  }
}

module attributes {stable_mosaic.version = 11 : i64} {
  func.func @_mult_attn_kernel(%arg0: i32, %arg1: i32, %arg2: i32, %arg3: memref<1x8x32xf32, #tpu.memory_space<vmem>>, %arg4: memref<32x32xf32, #tpu.memory_space<vmem>>, %arg5: memref<1x32xf32, #tpu.memory_space<vmem>>, %arg6: memref<1x8x32xf32, #tpu.memory_space<vmem>>, %arg7: memref<1x8x8xf32, #tpu.memory_space<vmem>>, %arg8: memref<8x32xf32, #tpu.memory_space<vmem>>) attributes {dimension_semantics = [#tpu.dimension_semantics<parallel>, #tpu.dimension_semantics<parallel>, #tpu.dimension_semantics<arbitrary>], iteration_bounds = array<i64: 2, 1, 1>, scalar_prefetch = 0 : i64, scratch_operands = 1 : i64, tpu.core_type = #tpu.core_type<tc>, window_params = [{transform_indices = @transform_0, window_bounds = array<i64: 1, 8, 32>}, {pipeline_mode = #tpu.pipeline_mode<synchronous>, transform_indices = @transform_1, window_bounds = array<i64: 32, 32>}, {pipeline_mode = #tpu.pipeline_mode<synchronous>, transform_indices = @transform_2, window_bounds = array<i64: 1, 32>}, {transform_indices = @transform_3, window_bounds = array<i64: 1, 8, 32>}, {transform_indices = @transform_4, window_bounds = array<i64: 1, 8, 8>}]} {
    %c0_i32 = arith.constant 0 : i32
    %0 = arith.cmpi eq, %arg2, %c0_i32 : i32
    %1 = arith.extui %0 : i1 to i32
    %c0_i32_0 = arith.constant 0 : i32
    %2 = arith.cmpi ne, %1, %c0_i32_0 : i32
    scf.if %2 {
      %c0_8 = arith.constant 0 : index
      %c0_9 = arith.constant 0 : index
      %c0_10 = arith.constant 0 : index
      %10 = vector.load %arg3[%c0_8, %c0_9, %c0_10] : memref<1x8x32xf32, #tpu.memory_space<vmem>>, vector<1x8x32xf32>
      %11 = vector.shape_cast %10 : vector<1x8x32xf32> to vector<8x32xf32>
      %c0_11 = arith.constant 0 : index
      %c0_12 = arith.constant 0 : index
      %12 = vector.load %arg4[%c0_11, %c0_12] : memref<32x32xf32, #tpu.memory_space<vmem>>, vector<32x32xf32>
      %cst_13 = arith.constant dense<0.000000e+00> : vector<8x32xf32>
      %13 = tpu.matmul %11, %12, %cst_13 {dimension_numbers = #tpu.dot_dimension_numbers<[1], [1], [0], [0], [0, 0, 1, 0], [], []>} : vector<8x32xf32>, vector<32x32xf32>, vector<8x32xf32> -> vector<8x32xf32>
      %c0_14 = arith.constant 0 : index
      %c0_15 = arith.constant 0 : index
      %14 = vector.load %arg5[%c0_14, %c0_15] : memref<1x32xf32, #tpu.memory_space<vmem>>, vector<1x32xf32>
      %15 = vector.broadcast %14 : vector<1x32xf32> to vector<8x32xf32>
      %16 = arith.addf %13, %15 : vector<8x32xf32>
      %c0_16 = arith.constant 0 : index
      %c0_17 = arith.constant 0 : index
      %17 = vector.load %arg8[%c0_16, %c0_17] : memref<8x32xf32, #tpu.memory_space<vmem>>, vector<8x32xf32>
      tpu.vector_store %arg8[%c0_16, %c0_17], %16 {strides = array<i32>} : memref<8x32xf32, #tpu.memory_space<vmem>>, vector<8x32xf32>,
    } else {
    }
    %c0 = arith.constant 0 : index
    %c0_1 = arith.constant 0 : index
    %3 = vector.load %arg8[%c0, %c0_1] : memref<8x32xf32, #tpu.memory_space<vmem>>, vector<8x32xf32>
    %c0_2 = arith.constant 0 : index
    %c0_3 = arith.constant 0 : index
    %c0_4 = arith.constant 0 : index
    %4 = vector.load %arg6[%c0_2, %c0_3, %c0_4] : memref<1x8x32xf32, #tpu.memory_space<vmem>>, vector<1x8x32xf32>
    %5 = vector.shape_cast %4 : vector<1x8x32xf32> to vector<8x32xf32>
    %cst = arith.constant dense<0.000000e+00> : vector<8x8xf32>
    %6 = tpu.matmul %3, %5, %cst {dimension_numbers = #tpu.dot_dimension_numbers<[1], [1], [0], [0], [0, 0, 1, 0], [], []>} : vector<8x32xf32>, vector<8x32xf32>, vector<8x8xf32> -> vector<8x8xf32>
    %c0_5 = arith.constant 0 : index
    %c0_6 = arith.constant 0 : index
    %c0_7 = arith.constant 0 : index
    %7 = vector.load %arg7[%c0_5, %c0_6, %c0_7] : memref<1x8x8xf32, #tpu.memory_space<vmem>>, vector<1x8x8xf32>
    %8 = vector.shape_cast %7 : vector<1x8x8xf32> to vector<8x8xf32>
    %9 = vector.shape_cast %6 : vector<8x8xf32> to vector<1x8x8xf32>
    tpu.vector_store %arg7[%c0_5, %c0_6, %c0_7], %9 {strides = array<i32>} : memref<1x8x8xf32, #tpu.memory_space<vmem>>, vector<1x8x8xf32>,
    return
  }
  func.func @transform_0(%arg0: i32, %arg1: i32, %arg2: i32) -> (i32, i32, i32) {
    %c0_i32 = arith.constant 0 : i32
    %c0_i32_0 = arith.constant 0 : i32
    return %arg0, %arg1, %c0_i32 : i32, i32, i32
  }
  func.func @transform_1(%arg0: i32, %arg1: i32, %arg2: i32) -> (i32, i32) {
    %c0_i32 = arith.constant 0 : i32
    %c0_i32_0 = arith.constant 0 : i32
    %c0_i32_1 = arith.constant 0 : i32
    return %c0_i32, %c0_i32_0 : i32, i32
  }
  func.func @transform_2(%arg0: i32, %arg1: i32, %arg2: i32) -> (i32, i32) {
    %c0_i32 = arith.constant 0 : i32
    %c0_i32_0 = arith.constant 0 : i32
    %c0_i32_1 = arith.constant 0 : i32
    return %c0_i32, %c0_i32_0 : i32, i32
  }
  func.func @transform_3(%arg0: i32, %arg1: i32, %arg2: i32) -> (i32, i32, i32) {
    %c0_i32 = arith.constant 0 : i32
    %c0_i32_0 = arith.constant 0 : i32
    return %arg0, %arg2, %c0_i32 : i32, i32, i32
  }
  func.func @transform_4(%arg0: i32, %arg1: i32, %arg2: i32) -> (i32, i32, i32) {
    %c0_i32 = arith.constant 0 : i32
    return %arg0, %arg1, %arg2 : i32, i32, i32
  }
}

</mosaic_0001>

<bundles_post_ra>
// kernel: tpu_custom_call.1
= control target key start
LH: loop header
LB: loop body
LE: loop exit
PB: predicated region body
PF: predicated region fallthrough
CT: control target
= control target key end

     0   :  { %9 = vsyncpa [#allocation4], 0  ;;  %s1166_s0 = inlined_call_operand.hbm [shape: f32[2,8,32], index: 0, kind: input, shape index: {}]   ;;  %s1167_s1 = inlined_call_operand.hbm [shape: f32[32,32], index: 1, kind: input, shape index: {}]   ;;  %s1168_s2 = inlined_call_operand.vmem [shape: f32[1,32], index: 2, kind: input, shape index: {}]   ;;  %s1169_s3 = inlined_call_operand.hbm [shape: f32[2,8,32], index: 3, kind: input, shape index: {}]   ;;  %s1170_s4 = inlined_call_operand.hbm [shape: f32[2,8,8], index: 4, kind: output, shape index: {}]  }
   0x1   :  { %11 = vsyncpa [#allocation4 + $0x1], 0 }
   0x2   :  { %12 = vsyncpa [#allocation7], 0 }
   0x3   :  { %13 = vsyncpa [#allocation5], 0 }
   0x4   :  { %15 = vsyncpa [#allocation5 + $0x1], 0  ;;  %s942_s15 = smov 0   ;;  %s944_s16 = smov 0  }
   0x5   :  { %s946_s17 = smov 0   ;;  %s948_s18 = smov 0  }
   0x6   :  { %s950_s19 = smov 0   ;;  %s952_s20 = smov 0  }
   0x7 LB: > { %s40_s21 = sadd.s32 1, %s903_s19  ;;  %s49_s22 = sadd.s32 1, %s895_s17  ;;  %s907_s20 = sphi %s952_s20, %s21_s20   ;;  %s903_s19 = sphi %s950_s19, %s1190_s19   ;;  %s899_s18 = sphi %s948_s18, %s1189_s18   ;;  %s895_s17 = sphi %s946_s17, %s1188_s17   ;;  %s891_s16 = sphi %s944_s16, %s1187_s16   ;;  %s887_s15 = sphi %s942_s15, %s1186_s15  }
   0x8   : > { %p42_p0 = scmp.ge.s32.totalorder %s40_s21, 2  ;;  %p56_p1 = scmp.ne.s32.totalorder %s895_s17, %s891_s16 }
   0x9   : > { %p57_p2 = scmp.eq.s32.totalorder %s907_s20, 0  ;;  %p681_p5 = scmp.lt.s32.totalorder %s907_s20, 2 }
   0xa   : > { %s1192_s21 = smov (%p42_p0, %s40_s21), 0  ;;  %s202_s24 = sand.u32 1, %s907_s20  }
   0xb   : > { %p58_p4 = por %p57_p2, %p56_p1  ;;  %s44_s23 = ssub.s32 %s903_s19, %s1192_s21 }
   0xc   : > { %p47_p6 = scmp.eq.s32.totalorder %s44_s23, 0  ;;  %s204_s25 = sand.u32 1, %s895_s17  }
   0xd   : > { %s612_s26 = sshll.u32 %s903_s19, 7  ;;  %s992_s28 = sshll.u32 %s204_s25, 3 }
   0xe   : > { %s990_s27 = scalar_select %p47_p6, %s895_s17, %s49_s22  }
   0xf   : > { %s212_s5 = scalar_lea.hbm %s1166_s0, %s612_s26  ;;  %p999_p7 = pnand %p681_p5, %p58_p4 }
  0x10   : > { %s206_s7 = scalar_lea.vmem [#allocation3], %s992_s28  ;;  %s1004_s9 = scalar_lea.sflag [#allocation4], %s202_s24 }
  0x11   : > { %s214_s8 = sshll.u32 %s206_s7, 4  ;;  %p739_p8 = pneg %p999_p7  ;;  %s215_s8 = int_to_ptr.vmem [resolvable:$true] %s214_s8 }
  0x12   : > { %s750_s10 = scalar_lea.vmem %s215_s8, 128  ;;  %s909_s11 = smov [#allocation3]  }
  0x13   : > { %p751_p9 = scmp.ne.s32.totalorder %s215_s8, %s750_s10  ;;  %s755_s12 = sshll.u32 %s909_s11, 4  ;;  %s756_s12 = int_to_ptr.vmem [resolvable:$false] %s755_s12 }
  0x14   : > { %s757_s13 = scalar_lea.vmem %s756_s12, 256  ;;  %p758_p12 = scmp.lt.s32.totalorder %s215_s8, %s756_s12 }
  0x15   : > { %p753_p10 = pnand %p751_p9, %p739_p8  ;;  %p759_p13 = scmp.lt.s32.totalorder %s757_s13, %s750_s10 }
  0x17   : > { %p754_p11 = pneg %p753_p10  ;;  %p760_p0 = por %p759_p13, %p758_p12 }
  0x19   : > { %p761_p2 = pnand %p760_p0, %p754_p11 }
  0x1b   : > { %764 = shalt.err (!%p761_p2)
}
  0x1c   : > { %672 = dma.hbm_to_vmem [thread:$0]  (!%p999_p7), %s212_s5, 128, %s215_s8, %s1004_s9  }
  0x1d   : > { %s1015_s14 = sadd.s32 4294967295, %s907_s20   ;;  %s607_s22 = sadd.s32 4294967294, %s907_s20  }
  0x1e   : > { %p62_p4 = scmp.ne.s32.totalorder %s891_s16, %s887_s15  ;;  %p1172_p5 = scmp.eq.s32.totalorder %s1015_s14, 0 }
  0x1f   : > { %p160_p6 = scmp.eq.s32.totalorder %s1015_s14, 1  ;;  %p166_p9 = scmp.eq.s32.totalorder %s607_s22, 1 }
  0x20   : > { %p608_p10 = scmp.ge.s32.totalorder %s907_s20, 1  ;;  %p1025_p11 = por %p1172_p5, %p62_p4 }
  0x21   : > { %p1032_p12 = por %p160_p6, %p56_p1  ;;  %p1036_p13 = por %p166_p9, %p62_p4 }
  0x22   : > { %s1175_s23 = scalar_select %p1025_p11, 1, 0 }
  0x23   : > { %s1176_s24 = scalar_select %p1032_p12, 1, 0 }
  0x24   : > { %s1177_s25 = scalar_select %p1036_p13, 1, 0 }
  0x25   : > { %p173_p0 = scmp.lt.s32.totalorder %s907_s20, 3  ;;  %s910_s30 = smov [#allocation6]  }
  0x26   : > { %s185_s5 = sshll.u32 %s910_s30, 4  ;;  %s231_s10 = scalar_lea.hbm %s1169_s3, %s612_s26  ;;  %s1050_s5 = int_to_ptr.vmem [resolvable:$true] %s185_s5 }
  0x27   : > { %p1041_p2 = pnand %p608_p10, %p173_p0  ;;  %s225_s11 = scalar_lea.vmem [#allocation8], %s992_s28 }
  0x28   : > { %s233_s12 = sshll.u32 %s225_s11, 4  ;;  %s911_s30 = smov [#allocation8]   ;;  %s234_s12 = int_to_ptr.vmem [resolvable:$true] %s233_s12 }
  0x29   : > { %p665_p1 = pneg %p1041_p2  ;;  %s778_s22 = scalar_lea.vmem %s234_s12, 128 }
  0x2a   : > { %p779_p6 = scmp.ne.s32.totalorder %s234_s12, %s778_s22  ;;  %s783_s26 = sshll.u32 %s911_s30, 4  ;;  %s784_s26 = int_to_ptr.vmem [resolvable:$false] %s783_s26 }
  0x2b   : > { %p1057_p4 = pnand %p665_p1, %p1172_p5  ;;  %s785_s7 = scalar_lea.vmem %s784_s26, 256 }
  0x2c   : > { %p781_p9 = pnand %p779_p6, %p739_p8  ;;  %p786_p0 = scmp.lt.s32.totalorder %s234_s12, %s784_s26 }
  0x2d   : > { %p787_p3 = scmp.lt.s32.totalorder %s785_s7, %s778_s22 }
  0x2e   : > { %p782_p10 = pneg %p781_p9 }
  0x2f   : > { %p788_p13 = por %p787_p3, %p786_p0 }
  0x31   : > { %p789_p12 = pnand %p788_p13, %p782_p10 }
  0x33   : > { %792 = shalt.err (!%p789_p12)
}
  0x34   : > { %675 = dma.hbm_to_vmem [thread:$0]  (!%p999_p7), %s231_s10, 128, %s234_s12, %s1004_s9  }
  0x35   : > { %p795_p8 = pneg %p1057_p4  ;;  %s804_s28 = scalar_lea.vmem %s1050_s5, 512 }
  0x36   : > { %p805_p1 = scmp.ne.s32.totalorder %s1050_s5, %s804_s28  ;;  %p812_p5 = scmp.lt.s32.totalorder %s1050_s5, %s1050_s5 }
  0x37   : > { %p813_p11 = scmp.lt.s32.totalorder %s804_s28, %s804_s28 }
  0x38   : > { %p807_p6 = pnand %p805_p1, %p795_p8 }
  0x39   : > { %p814_p3 = por %p813_p11, %p812_p5 }
  0x3a   : > { %p808_p9 = pneg %p807_p6 }
  0x3c   : > { %p815_p13 = pnand %p814_p3, %p808_p9 }
  0x3e   : > { %818 = shalt.err (!%p815_p13)
}
  0x3f   : > { %s912_s8 = smov 128   ;;  %s913_s6 = smov 8  }
  0x40   : > { %668 = dma.hbm_to_vmem [thread:$0]  (!%p1057_p4), %s1167_s1, 512, %s1050_s5, [#allocation7], %s912_s8, %s912_s8, %s913_s6  }
  0x41   : > { %242 = sbr.rel (%p1041_p2) target bundleno = 505 (0x1f9), region = 36  ;;  %s244_s9 = sand.u32 (!%p1041_p2), 1, %s1015_s14  }
  0x42   : > { %s246_s10 = sand.u32 (!%p1041_p2), 1, %s891_s16   ;;  %s245_s30 = scalar_lea.sflag (!%p1041_p2), [#allocation4], %s244_s9 }
  0x43   : > { %s1085_s12 = sshll.u32 (!%p1041_p2), %s246_s10, 3  ;;  %p1180_p7 = scmp.ne.s32.totalorder (!%p1041_p2), %s1175_s23, 0 }
  0x44   : > { %s248_s26 = scalar_lea.vmem (!%p1041_p2), [#allocation3], %s1085_s12 }
  0x46   : > { %870 = dma.done.wait (%p1180_p7), %s245_s30, 128  }
  0x47   : > { %872 = vsyncadd (%p1180_p7), %s245_s30, 4294967168  ;;  %p1181_p5 = scmp.eq.s32.totalorder %s1015_s14, 0 }
  0x49   : > { %874 = dma.done.wait (%p1181_p5), [#allocation7], 512   ;;  %p1182_p11 = pmov %p1181_p5 }
  0x4a   : > { %s261_s29 = scalar_lea.vmem [#allocation8], %s1085_s12 }
  0x4b   : > { %876 = vsyncadd (%p1182_p11), [#allocation7], 4294966784 }
  0x4c   : > { %878 = dma.done.wait (%p1180_p7), %s245_s30, 128  }
  0x4d   : > { %880 = vsyncadd (%p1180_p7), %s245_s30, 4294967168  ;;  %v914_v0 = vmov 0.0   ;;  %vm915_vm0 = vmmov 0   ;;  %vm307_vm1 = vcmask 261120   ;;  %v299_v1 = vld [vmem:[#allocation6 + $0x18] sm:$0xff]  ;;  %v298_v2 = vld [vmem:[#allocation6 + $0x10] sm:$0xff] }
  0x4e   : > { %639 = vmatprep.subr.mxu0 %v914_v0  ;;  %647 = vmatprep.mubr.msk.f32.mxu0 %vm915_vm0, %v914_v0  ;;  %v297_v3 = vld [vmem:[#allocation6 + $0x8] sm:$0xff]  ;;  %v296_v4 = vld [vmem:[#allocation6] sm:$0xff]  ;;  %v295_v5 = vld [vmem:[%s248_s26] sm:$0xff]  ;;  %s629_s5 = sshll.u32 %s899_s18, 7  ;;  %s290_s13 = scalar_lea.vmem [#allocation9], %s1085_s12  ;;  %vm473_vm2 = vcmask 64512  }
  0x4f   : > { %650 = vmatprep.subr.mxu1 %v914_v0  ;;  %652 = vmatprep.mubr.msk.f32.mxu1 %vm915_vm0, %v914_v0  ;;  %v395_v6 = vld [vmem:[%s261_s29] sm:$0xff]  ;;  %s491_s7 = sshll.u32 %s290_s13, 4  ;;  %s1117_s6 = scalar_lea.hbm %s1170_s4, %s629_s5  ;;  %s1119_s7 = int_to_ptr.vmem [resolvable:$true] %s491_s7 }
  0x50   : > { %640 = vmatpush3.xpose.msk.msra.mxu0 %vm307_vm1, %v299_v1  ;;  %651 = vmatpush3.xpose.msk.msra.mxu1 %vm307_vm1, %v395_v6  ;;  %v620_v7 = vld [vmem:[%s1168_s2] ss:$0 sm:$0xff]  ;;  %s476_s11 = scalar_lea.sflag [#allocation5], %s246_s10  ;;  %s819_s22 = scalar_lea.vmem %s1119_s7, 128 }
  0x51   : > { %641 = vmatprep.subr.mxu0 %v914_v0  ;;  %p820_p12 = scmp.ne.s32.totalorder %s1119_s7, %s819_s22  ;;  %p1183_p2 = scmp.ne.s32.totalorder %s1176_s24, 0 }
  0x52   : > { %s916_s18 = smov [#allocation9]  }
  0x53   : > { %p821_p4 = pnand %p820_p12, %p1183_p2  ;;  %s823_s9 = sshll.u32 %s916_s18, 4  ;;  %s824_s9 = int_to_ptr.vmem [resolvable:$false] %s823_s9 }
  0x54   : > { %642 = vmatpush3.xpose.msk.msra.mxu0 %vm307_vm1, %v298_v2  ;;  %s825_s12 = scalar_lea.vmem %s824_s9, 256  ;;  %p826_p0 = scmp.lt.s32.totalorder %s1119_s7, %s824_s9 }
  0x55   : > { %643 = vmatprep.subr.mxu0 %v914_v0  ;;  %p822_p10 = pneg %p821_p4  ;;  %p827_p8 = scmp.lt.s32.totalorder %s825_s12, %s819_s22 }
  0x57   : > { %p828_p1 = por %p827_p8, %p826_p0 }
  0x58   : > { %644 = vmatpush3.xpose.msk.msra.mxu0 %vm307_vm1, %v297_v3 }
  0x59   : > { %645 = vmatprep.subr.mxu0 %v914_v0  ;;  %p829_p6 = pnand %p828_p1, %p822_p10 }
  0x5c   : > { %646 = vmatpush3.xpose.msk.msra.mxu0 %vm307_vm1, %v296_v4 }
  0x5f   : > { %648 = vmatmul.mubr.msk.f32.vlgmr.msra.gmra.mxu0 %vm307_vm1, %v295_v5 }
 0x11f   : > { %v389_v8 = vpop.f32.mrf.mxu0 }
 0x120   : > { %v390_v9 = vadd.f32 %v620_v7, %v389_v8 }
 0x121   : > { %v649_v10 = vpop.f32.mrf.mxu0 }
 0x122   : > { %393 = vst.msk [vmem:[#allocation2] sm:$0xff] %vm307_vm1, %v390_v9 }
 0x129   : > { %v394_v11 = vld [vmem:[#allocation2] sm:$0xff] }
 0x12a   : > { %653 = vmatmul.mubr.msk.f32.vlgmr.msra.gmra.mxu1 %vm307_vm1, %v394_v11 }
 0x1ea   : > { %v469_v12 = vpop.f32.mrf.mxu1 }
 0x1eb   : > { %474 = vst.msk [vmem:[%s290_s13] sm:$0xff] %vm473_vm2, %v469_v12 }
 0x1ec   : > { %v654_v13 = vpop.f32.mrf.mxu1 }
 0x1ed   : > { %832 = shalt.err (!%p829_p6)
}
 0x1ee   : > { %s833_s30 = scalar_lea.hbm %s1117_s6, 128  ;;  %s837_s29 = scalar_lea.hbm %s1170_s4, 256 }
 0x1ef   : > { %p834_p9 = scmp.ne.s32.totalorder %s1117_s6, %s833_s30  ;;  %p838_p7 = scmp.lt.s32.totalorder %s1117_s6, %s1170_s4 }
 0x1f0   : > { %p839_p5 = scmp.lt.s32.totalorder %s837_s29, %s833_s30 }
 0x1f1   : > { %p835_p3 = pnand %p834_p9, %p1183_p2 }
 0x1f2   : > { %p840_p11 = por %p839_p5, %p838_p7 }
 0x1f3   : > { %p836_p13 = pneg %p835_p3 }
 0x1f5   : > { %p841_p12 = pnand %p840_p11, %p836_p13 }
 0x1f7   : > { %844 = shalt.err (!%p841_p12)
}
 0x1f8   : > { %663 = dma.vmem_to_hbm [thread:$0]  (%p1183_p2), %s1119_s7, 128, %s1117_s6, %s476_s11  }
 0x1f9 PF: > { %s503_s5 = sand.u32 1, %s887_s15   ;;  %p1184_p4 = scmp.ne.s32.totalorder %s1177_s25, 0 }
 0x1fa   : > { %p1185_p10 = scmp.ge.s32.totalorder %s907_s20, 2  ;;  %s504_s13 = scalar_lea.sflag [#allocation5], %s503_s5 }
 0x1fc   : > { %p677_p0 = pnand %p1185_p10, %p1184_p4 }
 0x1fe   : > { %p678_p8 = pneg %p677_p0 }
 0x200   : > { %882 = dma.done.wait (%p678_p8), %s504_s13, 128  }
 0x201   : > { %884 = vsyncadd (%p678_p8), %s504_s13, 4294967168  ;;  %s21_s20 = sadd.s32 1, %s907_s20   ;;  %s1186_s15 = smov %s891_s16 }
 0x202   : > { %p18_p1 = scmp.ge.s32.totalorder %s21_s20, 4   ;;  %s1187_s16 = smov %s895_s17 }
 0x203   : > { %s1188_s17 = smov %s990_s27  ;;  %s1189_s18 = smov %s903_s19 }
 0x204   : > { %s1190_s19 = smov %s1192_s21  ;;  %20 = sbr.rel (!%p18_p1) target bundleno = 7 (0x7), region = 100 }
 0x209   :  { %509 = vsyncpa [#allocation4], 1 }
 0x20a   :  { %511 = vsyncpa [#allocation4 + $0x1], 1 }
 0x20b   :  { %512 = vsyncpa [#allocation7], 1 }
 0x20c   :  { %513 = vsyncpa [#allocation5], 1 }
 0x20d   :  { %515 = vsyncpa [#allocation5 + $0x1], 1 }

// kernel: tpu_custom_call.1
= control target key start
LH: loop header
LB: loop body
LE: loop exit
PB: predicated region body
PF: predicated region fallthrough
CT: control target
= control target key end

     0   :  { %9 = vsyncpa [#allocation4], 0  ;;  %s1166_s0 = inlined_call_operand.hbm [shape: f32[2,8,32], index: 0, kind: input, shape index: {}]   ;;  %s1167_s1 = inlined_call_operand.hbm [shape: f32[32,32], index: 1, kind: input, shape index: {}]   ;;  %s1168_s2 = inlined_call_operand.vmem [shape: f32[1,32], index: 2, kind: input, shape index: {}]   ;;  %s1169_s3 = inlined_call_operand.hbm [shape: f32[2,8,32], index: 3, kind: input, shape index: {}]   ;;  %s1170_s4 = inlined_call_operand.hbm [shape: f32[2,8,8], index: 4, kind: output, shape index: {}]  }
   0x1   :  { %11 = vsyncpa [#allocation4 + $0x1], 0 }
   0x2   :  { %12 = vsyncpa [#allocation7], 0 }
   0x3   :  { %13 = vsyncpa [#allocation5], 0 }
   0x4   :  { %15 = vsyncpa [#allocation5 + $0x1], 0  ;;  %s942_s15 = smov 0   ;;  %s944_s16 = smov 0  }
   0x5   :  { %s946_s17 = smov 0   ;;  %s948_s18 = smov 0  }
   0x6   :  { %s950_s19 = smov 0   ;;  %s952_s20 = smov 0  }
   0x7 LB: > { %s40_s21 = sadd.s32 1, %s903_s19  ;;  %s49_s22 = sadd.s32 1, %s895_s17  ;;  %s907_s20 = sphi %s952_s20, %s21_s20   ;;  %s903_s19 = sphi %s950_s19, %s1190_s19   ;;  %s899_s18 = sphi %s948_s18, %s1189_s18   ;;  %s895_s17 = sphi %s946_s17, %s1188_s17   ;;  %s891_s16 = sphi %s944_s16, %s1187_s16   ;;  %s887_s15 = sphi %s942_s15, %s1186_s15  }
   0x8   : > { %p42_p0 = scmp.ge.s32.totalorder %s40_s21, 2  ;;  %p56_p1 = scmp.ne.s32.totalorder %s895_s17, %s891_s16 }
   0x9   : > { %p57_p2 = scmp.eq.s32.totalorder %s907_s20, 0  ;;  %p681_p5 = scmp.lt.s32.totalorder %s907_s20, 2 }
   0xa   : > { %s1192_s21 = smov (%p42_p0, %s40_s21), 0  ;;  %s202_s24 = sand.u32 1, %s907_s20  }
   0xb   : > { %p58_p4 = por %p57_p2, %p56_p1  ;;  %s44_s23 = ssub.s32 %s903_s19, %s1192_s21 }
   0xc   : > { %p47_p6 = scmp.eq.s32.totalorder %s44_s23, 0  ;;  %s204_s25 = sand.u32 1, %s895_s17  }
   0xd   : > { %s612_s26 = sshll.u32 %s903_s19, 7  ;;  %s992_s28 = sshll.u32 %s204_s25, 3 }
   0xe   : > { %s990_s27 = scalar_select %p47_p6, %s895_s17, %s49_s22  }
   0xf   : > { %s212_s5 = scalar_lea.hbm %s1166_s0, %s612_s26  ;;  %p999_p7 = pnand %p681_p5, %p58_p4 }
  0x10   : > { %s206_s7 = scalar_lea.vmem [#allocation3], %s992_s28  ;;  %s1004_s9 = scalar_lea.sflag [#allocation4], %s202_s24 }
  0x11   : > { %s214_s8 = sshll.u32 %s206_s7, 4  ;;  %p739_p8 = pneg %p999_p7  ;;  %s215_s8 = int_to_ptr.vmem [resolvable:$true] %s214_s8 }
  0x12   : > { %s750_s10 = scalar_lea.vmem %s215_s8, 128  ;;  %s909_s11 = smov [#allocation3]  }
  0x13   : > { %p751_p9 = scmp.ne.s32.totalorder %s215_s8, %s750_s10  ;;  %s755_s12 = sshll.u32 %s909_s11, 4  ;;  %s756_s12 = int_to_ptr.vmem [resolvable:$false] %s755_s12 }
  0x14   : > { %s757_s13 = scalar_lea.vmem %s756_s12, 256  ;;  %p758_p12 = scmp.lt.s32.totalorder %s215_s8, %s756_s12 }
  0x15   : > { %p753_p10 = pnand %p751_p9, %p739_p8  ;;  %p759_p13 = scmp.lt.s32.totalorder %s757_s13, %s750_s10 }
  0x17   : > { %p754_p11 = pneg %p753_p10  ;;  %p760_p0 = por %p759_p13, %p758_p12 }
  0x19   : > { %p761_p2 = pnand %p760_p0, %p754_p11 }
  0x1b   : > { %764 = shalt.err (!%p761_p2)
}
  0x1c   : > { %672 = dma.hbm_to_vmem [thread:$0]  (!%p999_p7), %s212_s5, 128, %s215_s8, %s1004_s9  }
  0x1d   : > { %s1015_s14 = sadd.s32 4294967295, %s907_s20   ;;  %s607_s22 = sadd.s32 4294967294, %s907_s20  }
  0x1e   : > { %p62_p4 = scmp.ne.s32.totalorder %s891_s16, %s887_s15  ;;  %p1172_p5 = scmp.eq.s32.totalorder %s1015_s14, 0 }
  0x1f   : > { %p160_p6 = scmp.eq.s32.totalorder %s1015_s14, 1  ;;  %p166_p9 = scmp.eq.s32.totalorder %s607_s22, 1 }
  0x20   : > { %p608_p10 = scmp.ge.s32.totalorder %s907_s20, 1  ;;  %p1025_p11 = por %p1172_p5, %p62_p4 }
  0x21   : > { %p1032_p12 = por %p160_p6, %p56_p1  ;;  %p1036_p13 = por %p166_p9, %p62_p4 }
  0x22   : > { %s1175_s23 = scalar_select %p1025_p11, 1, 0 }
  0x23   : > { %s1176_s24 = scalar_select %p1032_p12, 1, 0 }
  0x24   : > { %s1177_s25 = scalar_select %p1036_p13, 1, 0 }
  0x25   : > { %p173_p0 = scmp.lt.s32.totalorder %s907_s20, 3  ;;  %s910_s30 = smov [#allocation6]  }
  0x26   : > { %s185_s5 = sshll.u32 %s910_s30, 4  ;;  %s231_s10 = scalar_lea.hbm %s1169_s3, %s612_s26  ;;  %s1050_s5 = int_to_ptr.vmem [resolvable:$true] %s185_s5 }
  0x27   : > { %p1041_p2 = pnand %p608_p10, %p173_p0  ;;  %s225_s11 = scalar_lea.vmem [#allocation8], %s992_s28 }
  0x28   : > { %s233_s12 = sshll.u32 %s225_s11, 4  ;;  %s911_s30 = smov [#allocation8]   ;;  %s234_s12 = int_to_ptr.vmem [resolvable:$true] %s233_s12 }
  0x29   : > { %p665_p1 = pneg %p1041_p2  ;;  %s778_s22 = scalar_lea.vmem %s234_s12, 128 }
  0x2a   : > { %p779_p6 = scmp.ne.s32.totalorder %s234_s12, %s778_s22  ;;  %s783_s26 = sshll.u32 %s911_s30, 4  ;;  %s784_s26 = int_to_ptr.vmem [resolvable:$false] %s783_s26 }
  0x2b   : > { %p1057_p4 = pnand %p665_p1, %p1172_p5  ;;  %s785_s7 = scalar_lea.vmem %s784_s26, 256 }
  0x2c   : > { %p781_p9 = pnand %p779_p6, %p739_p8  ;;  %p786_p0 = scmp.lt.s32.totalorder %s234_s12, %s784_s26 }
  0x2d   : > { %p787_p3 = scmp.lt.s32.totalorder %s785_s7, %s778_s22 }
  0x2e   : > { %p782_p10 = pneg %p781_p9 }
  0x2f   : > { %p788_p13 = por %p787_p3, %p786_p0 }
  0x31   : > { %p789_p12 = pnand %p788_p13, %p782_p10 }
  0x33   : > { %792 = shalt.err (!%p789_p12)
}
  0x34   : > { %675 = dma.hbm_to_vmem [thread:$0]  (!%p999_p7), %s231_s10, 128, %s234_s12, %s1004_s9  }
  0x35   : > { %p795_p8 = pneg %p1057_p4  ;;  %s804_s28 = scalar_lea.vmem %s1050_s5, 512 }
  0x36   : > { %p805_p1 = scmp.ne.s32.totalorder %s1050_s5, %s804_s28  ;;  %p812_p5 = scmp.lt.s32.totalorder %s1050_s5, %s1050_s5 }
  0x37   : > { %p813_p11 = scmp.lt.s32.totalorder %s804_s28, %s804_s28 }
  0x38   : > { %p807_p6 = pnand %p805_p1, %p795_p8 }
  0x39   : > { %p814_p3 = por %p813_p11, %p812_p5 }
  0x3a   : > { %p808_p9 = pneg %p807_p6 }
  0x3c   : > { %p815_p13 = pnand %p814_p3, %p808_p9 }
  0x3e   : > { %818 = shalt.err (!%p815_p13)
}
  0x3f   : > { %s912_s8 = smov 128   ;;  %s913_s6 = smov 8  }
  0x40   : > { %668 = dma.hbm_to_vmem [thread:$0]  (!%p1057_p4), %s1167_s1, 512, %s1050_s5, [#allocation7], %s912_s8, %s912_s8, %s913_s6  }
  0x41   : > { %242 = sbr.rel (%p1041_p2) target bundleno = 505 (0x1f9), region = 36  ;;  %s244_s9 = sand.u32 (!%p1041_p2), 1, %s1015_s14  }
  0x42   : > { %s246_s10 = sand.u32 (!%p1041_p2), 1, %s891_s16   ;;  %s245_s30 = scalar_lea.sflag (!%p1041_p2), [#allocation4], %s244_s9 }
  0x43   : > { %s1085_s12 = sshll.u32 (!%p1041_p2), %s246_s10, 3  ;;  %p1180_p7 = scmp.ne.s32.totalorder (!%p1041_p2), %s1175_s23, 0 }
  0x44   : > { %s248_s26 = scalar_lea.vmem (!%p1041_p2), [#allocation3], %s1085_s12 }
  0x46   : > { %870 = dma.done.wait (%p1180_p7), %s245_s30, 128  }
  0x47   : > { %872 = vsyncadd (%p1180_p7), %s245_s30, 4294967168  ;;  %p1181_p5 = scmp.eq.s32.totalorder %s1015_s14, 0 }
  0x49   : > { %874 = dma.done.wait (%p1181_p5), [#allocation7], 512   ;;  %p1182_p11 = pmov %p1181_p5 }
  0x4a   : > { %s261_s29 = scalar_lea.vmem [#allocation8], %s1085_s12 }
  0x4b   : > { %876 = vsyncadd (%p1182_p11), [#allocation7], 4294966784 }
  0x4c   : > { %878 = dma.done.wait (%p1180_p7), %s245_s30, 128  }
  0x4d   : > { %880 = vsyncadd (%p1180_p7), %s245_s30, 4294967168  ;;  %v914_v0 = vmov 0.0   ;;  %vm915_vm0 = vmmov 0   ;;  %vm307_vm1 = vcmask 261120   ;;  %v299_v1 = vld [vmem:[#allocation6 + $0x18] sm:$0xff]  ;;  %v298_v2 = vld [vmem:[#allocation6 + $0x10] sm:$0xff] }
  0x4e   : > { %639 = vmatprep.subr.mxu0 %v914_v0  ;;  %647 = vmatprep.mubr.msk.f32.mxu0 %vm915_vm0, %v914_v0  ;;  %v297_v3 = vld [vmem:[#allocation6 + $0x8] sm:$0xff]  ;;  %v296_v4 = vld [vmem:[#allocation6] sm:$0xff]  ;;  %v295_v5 = vld [vmem:[%s248_s26] sm:$0xff]  ;;  %s629_s5 = sshll.u32 %s899_s18, 7  ;;  %s290_s13 = scalar_lea.vmem [#allocation9], %s1085_s12  ;;  %vm473_vm2 = vcmask 64512  }
  0x4f   : > { %650 = vmatprep.subr.mxu1 %v914_v0  ;;  %652 = vmatprep.mubr.msk.f32.mxu1 %vm915_vm0, %v914_v0  ;;  %v395_v6 = vld [vmem:[%s261_s29] sm:$0xff]  ;;  %s491_s7 = sshll.u32 %s290_s13, 4  ;;  %s1117_s6 = scalar_lea.hbm %s1170_s4, %s629_s5  ;;  %s1119_s7 = int_to_ptr.vmem [resolvable:$true] %s491_s7 }
  0x50   : > { %640 = vmatpush3.xpose.msk.msra.mxu0 %vm307_vm1, %v299_v1  ;;  %651 = vmatpush3.xpose.msk.msra.mxu1 %vm307_vm1, %v395_v6  ;;  %v620_v7 = vld [vmem:[%s1168_s2] ss:$0 sm:$0xff]  ;;  %s476_s11 = scalar_lea.sflag [#allocation5], %s246_s10  ;;  %s819_s22 = scalar_lea.vmem %s1119_s7, 128 }
  0x51   : > { %641 = vmatprep.subr.mxu0 %v914_v0  ;;  %p820_p12 = scmp.ne.s32.totalorder %s1119_s7, %s819_s22  ;;  %p1183_p2 = scmp.ne.s32.totalorder %s1176_s24, 0 }
  0x52   : > { %s916_s18 = smov [#allocation9]  }
  0x53   : > { %p821_p4 = pnand %p820_p12, %p1183_p2  ;;  %s823_s9 = sshll.u32 %s916_s18, 4  ;;  %s824_s9 = int_to_ptr.vmem [resolvable:$false] %s823_s9 }
  0x54   : > { %642 = vmatpush3.xpose.msk.msra.mxu0 %vm307_vm1, %v298_v2  ;;  %s825_s12 = scalar_lea.vmem %s824_s9, 256  ;;  %p826_p0 = scmp.lt.s32.totalorder %s1119_s7, %s824_s9 }
  0x55   : > { %643 = vmatprep.subr.mxu0 %v914_v0  ;;  %p822_p10 = pneg %p821_p4  ;;  %p827_p8 = scmp.lt.s32.totalorder %s825_s12, %s819_s22 }
  0x57   : > { %p828_p1 = por %p827_p8, %p826_p0 }
  0x58   : > { %644 = vmatpush3.xpose.msk.msra.mxu0 %vm307_vm1, %v297_v3 }
  0x59   : > { %645 = vmatprep.subr.mxu0 %v914_v0  ;;  %p829_p6 = pnand %p828_p1, %p822_p10 }
  0x5c   : > { %646 = vmatpush3.xpose.msk.msra.mxu0 %vm307_vm1, %v296_v4 }
  0x5f   : > { %648 = vmatmul.mubr.msk.f32.vlgmr.msra.gmra.mxu0 %vm307_vm1, %v295_v5 }
 0x11f   : > { %v389_v8 = vpop.f32.mrf.mxu0 }
 0x120   : > { %v390_v9 = vadd.f32 %v620_v7, %v389_v8 }
 0x121   : > { %v649_v10 = vpop.f32.mrf.mxu0 }
 0x122   : > { %393 = vst.msk [vmem:[#allocation2] sm:$0xff] %vm307_vm1, %v390_v9 }
 0x129   : > { %v394_v11 = vld [vmem:[#allocation2] sm:$0xff] }
 0x12a   : > { %653 = vmatmul.mubr.msk.f32.vlgmr.msra.gmra.mxu1 %vm307_vm1, %v394_v11 }
 0x1ea   : > { %v469_v12 = vpop.f32.mrf.mxu1 }
 0x1eb   : > { %474 = vst.msk [vmem:[%s290_s13] sm:$0xff] %vm473_vm2, %v469_v12 }
 0x1ec   : > { %v654_v13 = vpop.f32.mrf.mxu1 }
 0x1ed   : > { %832 = shalt.err (!%p829_p6)
}
 0x1ee   : > { %s833_s30 = scalar_lea.hbm %s1117_s6, 128  ;;  %s837_s29 = scalar_lea.hbm %s1170_s4, 256 }
 0x1ef   : > { %p834_p9 = scmp.ne.s32.totalorder %s1117_s6, %s833_s30  ;;  %p838_p7 = scmp.lt.s32.totalorder %s1117_s6, %s1170_s4 }
 0x1f0   : > { %p839_p5 = scmp.lt.s32.totalorder %s837_s29, %s833_s30 }
 0x1f1   : > { %p835_p3 = pnand %p834_p9, %p1183_p2 }
 0x1f2   : > { %p840_p11 = por %p839_p5, %p838_p7 }
 0x1f3   : > { %p836_p13 = pneg %p835_p3 }
 0x1f5   : > { %p841_p12 = pnand %p840_p11, %p836_p13 }
 0x1f7   : > { %844 = shalt.err (!%p841_p12)
}
 0x1f8   : > { %663 = dma.vmem_to_hbm [thread:$0]  (%p1183_p2), %s1119_s7, 128, %s1117_s6, %s476_s11  }
 0x1f9 PF: > { %s503_s5 = sand.u32 1, %s887_s15   ;;  %p1184_p4 = scmp.ne.s32.totalorder %s1177_s25, 0 }
 0x1fa   : > { %p1185_p10 = scmp.ge.s32.totalorder %s907_s20, 2  ;;  %s504_s13 = scalar_lea.sflag [#allocation5], %s503_s5 }
 0x1fc   : > { %p677_p0 = pnand %p1185_p10, %p1184_p4 }
 0x1fe   : > { %p678_p8 = pneg %p677_p0 }
 0x200   : > { %882 = dma.done.wait (%p678_p8), %s504_s13, 128  }
 0x201   : > { %884 = vsyncadd (%p678_p8), %s504_s13, 4294967168  ;;  %s21_s20 = sadd.s32 1, %s907_s20   ;;  %s1186_s15 = smov %s891_s16 }
 0x202   : > { %p18_p1 = scmp.ge.s32.totalorder %s21_s20, 4   ;;  %s1187_s16 = smov %s895_s17 }
 0x203   : > { %s1188_s17 = smov %s990_s27  ;;  %s1189_s18 = smov %s903_s19 }
 0x204   : > { %s1190_s19 = smov %s1192_s21  ;;  %20 = sbr.rel (!%p18_p1) target bundleno = 7 (0x7), region = 100 }
 0x209   :  { %509 = vsyncpa [#allocation4], 1 }
 0x20a   :  { %511 = vsyncpa [#allocation4 + $0x1], 1 }
 0x20b   :  { %512 = vsyncpa [#allocation7], 1 }
 0x20c   :  { %513 = vsyncpa [#allocation5], 1 }
 0x20d   :  { %515 = vsyncpa [#allocation5 + $0x1], 1 }

</bundles_post_ra>
